<compile_context>
chip_gen: v5e
topology: v5e:2x2
jax: 0.10.0
libtpu: 0.0.40
codegen_flags: <defaults>
</compile_context>

<pallas_src>
import functools

import jax
import jax.numpy as jnp
from jax.experimental import pallas as pl
from jax.experimental.pallas import tpu as pltpu


def _round_up(x, m):
    return (x + m - 1) // m * m


def _default_vmem_limit_bytes():
    # Generation-aware VMEM budget: v5e/v6e have 128 MiB physical VMEM,
    # v7x has 64 MiB per TensorCore.
    try:
        cap = int(pltpu.get_tpu_info().vmem_capacity_bytes)
    except Exception:
        cap = 64 << 20  # conservative (v7x-sized) fallback
    return (100 << 20) if cap >= (96 << 20) else (52 << 20)


def _choose_tiles(B, R, D, Lp, x_itemsize, w_itemsize, vmem_limit_bytes, tb, tr):
    """Pick (tb, tr): batch tile rows and region-chunk size (tr divides R)."""
    headroom = 4 << 20
    w_bytes = D * Lp * w_itemsize          # single resident copy (Buffered(1))
    b_bytes = Lp * 4
    avail = max(vmem_limit_bytes - w_bytes - b_bytes - headroom, 1 << 20)

    # --- region chunking (innermost "arbitrary" reduction axis) -------------
    if tr is None:
        tr = R
        # Even the minimum 8-row batch tile blows the budget -> chunk R.
        min_tile_bytes = 2 * 8 * R * D * x_itemsize + 2 * 8 * Lp * 4
        if min_tile_bytes > avail and R % 8 == 0:
            max_tr = max(8, (avail - 2 * 8 * Lp * 4) // (2 * 8 * D * x_itemsize))
            best = None
            for cand in range(8, R, 8):          # multiples of 8 that divide R
                if R % cand == 0 and cand <= max_tr:
                    best = cand                  # keep largest fitting divisor
            tr = best if best is not None else 8
        # TODO(synk): mask the R remainder so chunking also works when R % 8 != 0.
    else:
        # Validate a user-provided chunk: must divide R and respect sublane rule.
        if R % tr != 0 or (tr != R and tr % 8 != 0):
            tr = R

    # --- batch tile: byte-budget driven, no artificial cap ------------------
    if tb is None:
        per_row = 2 * tr * D * x_itemsize + 2 * Lp * 4   # 2x streamed x + 2x out
        tb = max(8, (avail // per_row) // 8 * 8)

    # Don't over-allocate for small batches.
    tb = min(tb, _round_up(B, 8))
    # Keep >=2 (>=4 for big B) batch steps: DMA/compute overlap + v7x megacore.
    if B > 8:
        steps = 4 if B >= 64 else 2
        tb = min(tb, max(8, _round_up(pl.cdiv(B, steps), 8)))
    tb = max(8, (tb // 8) * 8)
    return tb, tr


def _vse_kernel(x_ref, w_ref, b_ref, o_ref, *, inv_r, normalize):
    # x_ref: (tb, tr, D)   w_ref: (D, Lp)   b_ref: (1, Lp)   o_ref: (tb, Lp) f32
    r = pl.program_id(1)

    @pl.when(r == 0)
    def _init():
        o_ref[...] = jnp.zeros_like(o_ref)

    # Partial region sum in f32 (mean's 1/R division deferred to finalize).
    region_sum = jnp.sum(x_ref[...], axis=1, dtype=jnp.float32)      # (tb, D)
    lhs = (region_sum if w_ref.dtype == jnp.float32
           else region_sum.astype(w_ref.dtype))
    o_ref[...] += jnp.dot(lhs, w_ref[...],
                          preferred_element_type=jnp.float32)        # (tb, Lp)

    @pl.when(r == pl.num_programs(1) - 1)
    def _finalize():
        feats = o_ref[...] * inv_r + b_ref[...]
        if normalize:
            # l2norm: x / (sqrt(sum x^2) + eps), eps outside the sqrt (as torch).
            sq_sum = jnp.sum(feats * feats, axis=-1, keepdims=True)  # (tb, 1)
            denom = jnp.sqrt(sq_sum) + 1e-8
            inv0 = pl.reciprocal(denom, approx=True)   # EUP slot (cheap)
            inv = inv0 * (2.0 - denom * inv0)          # Newton step -> full precision
            feats = feats * inv
        o_ref[...] = feats.astype(o_ref.dtype)


def vse_image_encoder(images, w, b, *, no_imgnorm=False, tb=None, tr=None,
                      weight_dtype=None, vmem_limit_bytes=None):
    """images: (B, R, D); w: (D, L) (Linear weight pre-transposed); b: (L,).

    Returns (B, 1, L) float32, matching VSEImageEncoder.forward.
    """
    B, R, D = images.shape
    L = w.shape[1]
    x_itemsize = jnp.dtype(images.dtype).itemsize

    if weight_dtype is not None:          # e.g. jnp.bfloat16 to halve W traffic
        w = w.astype(weight_dtype)
    w_itemsize = jnp.dtype(w.dtype).itemsize

    # --- lane-dense output: pad L up to a multiple of 128 (weights only) ----
    Lp = _round_up(L, 128)
    if Lp != L:
        w = jnp.pad(w, ((0, 0), (0, Lp - L)))
        b = jnp.pad(b, (0, Lp - L))
    bias2d = b.reshape(1, Lp).astype(jnp.float32)

    if vmem_limit_bytes is None:
        vmem_limit_bytes = _default_vmem_limit_bytes()

    tb, tr = _choose_tiles(B, R, D, Lp, x_itemsize, w_itemsize,
                           vmem_limit_bytes, tb, tr)
    gb = pl.cdiv(B, tb)        # partial last batch block handled by Pallas
    gr = R // tr               # tr always divides R

    kernel = functools.partial(_vse_kernel, inv_r=1.0 / R,
                               normalize=not no_imgnorm)

    cost = pl.CostEstimate(
        flops=2 * B * D * Lp + B * R * D,
        transcendentals=B,
        bytes_accessed=(B * R * D * x_itemsize + D * Lp * w_itemsize
                        + Lp * 4 + B * Lp * 4),
    )

    def build(single_buffer_params):
        resident = (dict(pipeline_mode=pl.Buffered(1))
                    if single_buffer_params else {})
        return pl.pallas_call(
            kernel,
            out_shape=jax.ShapeDtypeStruct((B, Lp), jnp.float32),
            grid=(gb, gr),
            in_specs=[
                # streamed batch/region tile (double-buffered by default)
                pl.BlockSpec((tb, tr, D), lambda i, r: (i, r, 0)),
                # resident weight / bias (constant index map -> fetched once)
                pl.BlockSpec((D, Lp), lambda i, r: (0, 0), **resident),
                pl.BlockSpec((1, Lp), lambda i, r: (0, 0), **resident),
            ],
            out_specs=pl.BlockSpec((tb, Lp), lambda i, r: (i, 0)),
            compiler_params=pltpu.CompilerParams(
                dimension_semantics=("parallel", "arbitrary"),
                vmem_limit_bytes=vmem_limit_bytes),
            cost_estimate=cost,
        )

    try:
        out = build(True)(images, w, bias2d)
    except Exception:
        # Fallback if this jax version rejects single-buffered BlockSpecs.
        out = build(False)(images, w, bias2d)

    return out[:, :L].reshape(B, 1, L)


def _reference(images, w, b, no_imgnorm=False):
    pooled = jnp.mean(images.astype(jnp.float32), axis=1)    # (B, D)
    feats = pooled @ w + b                                   # (B, L)
    if not no_imgnorm:
        norm = jnp.sqrt(jnp.sum(feats * feats, axis=-1, keepdims=True)) + 1e-8
        feats = feats / norm
    return feats.reshape(images.shape[0], 1, -1)


if __name__ == "__main__":
    key = jax.random.PRNGKey(0)
    k1, k2, k3, k4, k5, k6 = jax.random.split(key, 6)

    # ---- Config A: toy sizes matching the module (single grid step) --------
    B, R, img_dim, latent_size = 8, 8, 32, 32
    images = jax.random.normal(k1, (B, R, img_dim), dtype=jnp.float32)
    bound = 1.0 / (img_dim ** 0.5)
    # PyTorch Linear weight is (latent, img_dim); kept pre-transposed as
    # (img_dim, latent) so the kernel does a plain (B,D)@(D,L) contraction.
    w = jax.random.uniform(k2, (img_dim, latent_size),
                           minval=-bound, maxval=bound, dtype=jnp.float32)
    b = jax.random.uniform(k3, (latent_size,),
                           minval=-bound, maxval=bound, dtype=jnp.float32)

    out = jax.block_until_ready(vse_image_encoder(images, w, b))
    ref = _reference(images, w, b)
    assert out.shape == (B, 1, latent_size)
    assert jnp.allclose(out, ref, atol=1e-4, rtol=1e-4), (
        float(jnp.max(jnp.abs(out - ref))))

    # ---- Config B: multi-step batch grid + chunked-R accumulation path -----
    B2, R2, D2, L2 = 24, 16, 128, 64
    images2 = jax.random.normal(k4, (B2, R2, D2), dtype=jnp.float32)
    bound2 = 1.0 / (D2 ** 0.5)
    w2 = jax.random.uniform(k5, (D2, L2), minval=-bound2, maxval=bound2,
                            dtype=jnp.float32)
    b2 = jax.random.uniform(k6, (L2,), minval=-bound2, maxval=bound2,
                            dtype=jnp.float32)
    out2 = jax.block_until_ready(
        vse_image_encoder(images2, w2, b2, tb=8, tr=8))
    ref2 = _reference(images2, w2, b2)
    assert out2.shape == (B2, 1, L2)
    assert jnp.allclose(out2, ref2, atol=1e-4, rtol=1e-4), (
        float(jnp.max(jnp.abs(out2 - ref2))))

    print("KERNEL_OK")
</pallas_src>

<mosaic_0001>
module attributes {stable_mosaic.version = 11 : i64} {
  func.func @_vse_kernel(%arg0: i32, %arg1: i32, %arg2: memref<8x8x32xf32, #tpu.memory_space<vmem>>, %arg3: memref<32x128xf32, #tpu.memory_space<vmem>>, %arg4: memref<1x128xf32, #tpu.memory_space<vmem>>, %arg5: memref<8x128xf32, #tpu.memory_space<vmem>>) attributes {dimension_semantics = [#tpu.dimension_semantics<parallel>, #tpu.dimension_semantics<arbitrary>], iteration_bounds = array<i64: 1, 1>, scalar_prefetch = 0 : i64, scratch_operands = 0 : i64, tpu.core_type = #tpu.core_type<tc>, window_params = [{transform_indices = @transform_0, window_bounds = array<i64: 8, 8, 32>}, {pipeline_mode = #tpu.pipeline_mode<synchronous>, transform_indices = @transform_1, window_bounds = array<i64: 32, 128>}, {pipeline_mode = #tpu.pipeline_mode<synchronous>, transform_indices = @transform_2, window_bounds = array<i64: 1, 128>}, {transform_indices = @transform_3, window_bounds = array<i64: 8, 128>}]} {
    %c0_i32 = arith.constant 0 : i32
    %0 = arith.cmpi eq, %arg1, %c0_i32 : i32
    %1 = arith.extui %0 : i1 to i32
    %c0_i32_0 = arith.constant 0 : i32
    %2 = arith.cmpi ne, %1, %c0_i32_0 : i32
    scf.if %2 {
      %cst_12 = arith.constant 0.000000e+00 : f32
      %13 = vector.broadcast %cst_12 : f32 to vector<8x128xf32>
      %c0_13 = arith.constant 0 : index
      %c0_14 = arith.constant 0 : index
      %14 = vector.load %arg5[%c0_13, %c0_14] : memref<8x128xf32, #tpu.memory_space<vmem>>, vector<8x128xf32>
      tpu.vector_store %arg5[%c0_13, %c0_14], %13 {strides = array<i32>} : memref<8x128xf32, #tpu.memory_space<vmem>>, vector<8x128xf32>,
    } else {
    }
    %c0 = arith.constant 0 : index
    %c0_1 = arith.constant 0 : index
    %c0_2 = arith.constant 0 : index
    %3 = vector.load %arg2[%c0, %c0_1, %c0_2] : memref<8x8x32xf32, #tpu.memory_space<vmem>>, vector<8x8x32xf32>
    %cst = arith.constant dense<0.000000e+00> : vector<8x32xf32>
    %4 = vector.multi_reduction <add>, %3, %cst [1] : vector<8x8x32xf32> to vector<8x32xf32>
    %c0_3 = arith.constant 0 : index
    %c0_4 = arith.constant 0 : index
    %5 = vector.load %arg5[%c0_3, %c0_4] : memref<8x128xf32, #tpu.memory_space<vmem>>, vector<8x128xf32>
    %c0_5 = arith.constant 0 : index
    %c0_6 = arith.constant 0 : index
    %6 = vector.load %arg3[%c0_5, %c0_6] : memref<32x128xf32, #tpu.memory_space<vmem>>, vector<32x128xf32>
    %cst_7 = arith.constant dense<0.000000e+00> : vector<8x128xf32>
    %7 = tpu.matmul %4, %6, %cst_7 {dimension_numbers = #tpu.dot_dimension_numbers<[1], [0], [0], [1], [0, 0, 1, 1], [], []>} : vector<8x32xf32>, vector<32x128xf32>, vector<8x128xf32> -> vector<8x128xf32>
    %8 = arith.addf %5, %7 : vector<8x128xf32>
    %c0_8 = arith.constant 0 : index
    %c0_9 = arith.constant 0 : index
    %9 = vector.load %arg5[%c0_8, %c0_9] : memref<8x128xf32, #tpu.memory_space<vmem>>, vector<8x128xf32>
    tpu.vector_store %arg5[%c0_8, %c0_9], %8 {strides = array<i32>} : memref<8x128xf32, #tpu.memory_space<vmem>>, vector<8x128xf32>,
    %c0_i32_10 = arith.constant 0 : i32
    %10 = arith.cmpi eq, %arg1, %c0_i32_10 : i32
    %11 = arith.extui %10 : i1 to i32
    %c0_i32_11 = arith.constant 0 : i32
    %12 = arith.cmpi ne, %11, %c0_i32_11 : i32
    scf.if %12 {
      %c0_12 = arith.constant 0 : index
      %c0_13 = arith.constant 0 : index
      %13 = vector.load %arg5[%c0_12, %c0_13] : memref<8x128xf32, #tpu.memory_space<vmem>>, vector<8x128xf32>
      %cst_14 = arith.constant 1.250000e-01 : f32
      %14 = vector.broadcast %cst_14 : f32 to vector<8x128xf32>
      %15 = arith.mulf %13, %14 : vector<8x128xf32>
      %c0_15 = arith.constant 0 : index
      %c0_16 = arith.constant 0 : index
      %16 = vector.load %arg4[%c0_15, %c0_16] : memref<1x128xf32, #tpu.memory_space<vmem>>, vector<1x128xf32>
      %17 = vector.broadcast %16 : vector<1x128xf32> to vector<8x128xf32>
      %18 = arith.addf %15, %17 : vector<8x128xf32>
      %19 = arith.mulf %18, %18 : vector<8x128xf32>
      %cst_17 = arith.constant dense<0.000000e+00> : vector<8xf32>
      %20 = vector.multi_reduction <add>, %19, %cst_17 [1] : vector<8x128xf32> to vector<8xf32>
      %21 = vector.shape_cast %20 : vector<8xf32> to vector<8x1xf32>
      %22 = math.sqrt %21 : vector<8x1xf32>
      %cst_18 = arith.constant 9.99999993E-9 : f32
      %23 = vector.broadcast %cst_18 : f32 to vector<8x1xf32>
      %24 = arith.addf %22, %23 : vector<8x1xf32>
      %25 = tpu.reciprocal %24 {approx = true} : vector<8x1xf32> -> vector<8x1xf32>
      %26 = arith.mulf %24, %25 : vector<8x1xf32>
      %cst_19 = arith.constant 2.000000e+00 : f32
      %27 = vector.broadcast %cst_19 : f32 to vector<8x1xf32>
      %28 = arith.subf %27, %26 : vector<8x1xf32>
      %29 = arith.mulf %25, %28 : vector<8x1xf32>
      %30 = vector.broadcast %29 : vector<8x1xf32> to vector<8x128xf32>
      %31 = arith.mulf %18, %30 : vector<8x128xf32>
      %c0_20 = arith.constant 0 : index
      %c0_21 = arith.constant 0 : index
      %32 = vector.load %arg5[%c0_20, %c0_21] : memref<8x128xf32, #tpu.memory_space<vmem>>, vector<8x128xf32>
      tpu.vector_store %arg5[%c0_20, %c0_21], %31 {strides = array<i32>} : memref<8x128xf32, #tpu.memory_space<vmem>>, vector<8x128xf32>,
    } else {
    }
    return
  }
  func.func @transform_0(%arg0: i32, %arg1: i32) -> (i32, i32, i32) {
    %c0_i32 = arith.constant 0 : i32
    %c0_i32_0 = arith.constant 0 : i32
    return %arg0, %arg1, %c0_i32 : i32, i32, i32
  }
  func.func @transform_1(%arg0: i32, %arg1: i32) -> (i32, i32) {
    %c0_i32 = arith.constant 0 : i32
    %c0_i32_0 = arith.constant 0 : i32
    %c0_i32_1 = arith.constant 0 : i32
    return %c0_i32, %c0_i32_0 : i32, i32
  }
  func.func @transform_2(%arg0: i32, %arg1: i32) -> (i32, i32) {
    %c0_i32 = arith.constant 0 : i32
    %c0_i32_0 = arith.constant 0 : i32
    %c0_i32_1 = arith.constant 0 : i32
    return %c0_i32, %c0_i32_0 : i32, i32
  }
  func.func @transform_3(%arg0: i32, %arg1: i32) -> (i32, i32) {
    %c0_i32 = arith.constant 0 : i32
    %c0_i32_0 = arith.constant 0 : i32
    return %arg0, %c0_i32 : i32, i32
  }
}

module attributes {stable_mosaic.version = 11 : i64} {
  func.func @_vse_kernel(%arg0: i32, %arg1: i32, %arg2: memref<8x8x32xf32, #tpu.memory_space<vmem>>, %arg3: memref<32x128xf32, #tpu.memory_space<vmem>>, %arg4: memref<1x128xf32, #tpu.memory_space<vmem>>, %arg5: memref<8x128xf32, #tpu.memory_space<vmem>>) attributes {dimension_semantics = [#tpu.dimension_semantics<parallel>, #tpu.dimension_semantics<arbitrary>], iteration_bounds = array<i64: 1, 1>, scalar_prefetch = 0 : i64, scratch_operands = 0 : i64, tpu.core_type = #tpu.core_type<tc>, window_params = [{transform_indices = @transform_0, window_bounds = array<i64: 8, 8, 32>}, {pipeline_mode = #tpu.pipeline_mode<synchronous>, transform_indices = @transform_1, window_bounds = array<i64: 32, 128>}, {pipeline_mode = #tpu.pipeline_mode<synchronous>, transform_indices = @transform_2, window_bounds = array<i64: 1, 128>}, {transform_indices = @transform_3, window_bounds = array<i64: 8, 128>}]} {
    %c0_i32 = arith.constant 0 : i32
    %0 = arith.cmpi eq, %arg1, %c0_i32 : i32
    %1 = arith.extui %0 : i1 to i32
    %c0_i32_0 = arith.constant 0 : i32
    %2 = arith.cmpi ne, %1, %c0_i32_0 : i32
    scf.if %2 {
      %cst_12 = arith.constant 0.000000e+00 : f32
      %13 = vector.broadcast %cst_12 : f32 to vector<8x128xf32>
      %c0_13 = arith.constant 0 : index
      %c0_14 = arith.constant 0 : index
      %14 = vector.load %arg5[%c0_13, %c0_14] : memref<8x128xf32, #tpu.memory_space<vmem>>, vector<8x128xf32>
      tpu.vector_store %arg5[%c0_13, %c0_14], %13 {strides = array<i32>} : memref<8x128xf32, #tpu.memory_space<vmem>>, vector<8x128xf32>,
    } else {
    }
    %c0 = arith.constant 0 : index
    %c0_1 = arith.constant 0 : index
    %c0_2 = arith.constant 0 : index
    %3 = vector.load %arg2[%c0, %c0_1, %c0_2] : memref<8x8x32xf32, #tpu.memory_space<vmem>>, vector<8x8x32xf32>
    %cst = arith.constant dense<0.000000e+00> : vector<8x32xf32>
    %4 = vector.multi_reduction <add>, %3, %cst [1] : vector<8x8x32xf32> to vector<8x32xf32>
    %c0_3 = arith.constant 0 : index
    %c0_4 = arith.constant 0 : index
    %5 = vector.load %arg5[%c0_3, %c0_4] : memref<8x128xf32, #tpu.memory_space<vmem>>, vector<8x128xf32>
    %c0_5 = arith.constant 0 : index
    %c0_6 = arith.constant 0 : index
    %6 = vector.load %arg3[%c0_5, %c0_6] : memref<32x128xf32, #tpu.memory_space<vmem>>, vector<32x128xf32>
    %cst_7 = arith.constant dense<0.000000e+00> : vector<8x128xf32>
    %7 = tpu.matmul %4, %6, %cst_7 {dimension_numbers = #tpu.dot_dimension_numbers<[1], [0], [0], [1], [0, 0, 1, 1], [], []>} : vector<8x32xf32>, vector<32x128xf32>, vector<8x128xf32> -> vector<8x128xf32>
    %8 = arith.addf %5, %7 : vector<8x128xf32>
    %c0_8 = arith.constant 0 : index
    %c0_9 = arith.constant 0 : index
    %9 = vector.load %arg5[%c0_8, %c0_9] : memref<8x128xf32, #tpu.memory_space<vmem>>, vector<8x128xf32>
    tpu.vector_store %arg5[%c0_8, %c0_9], %8 {strides = array<i32>} : memref<8x128xf32, #tpu.memory_space<vmem>>, vector<8x128xf32>,
    %c0_i32_10 = arith.constant 0 : i32
    %10 = arith.cmpi eq, %arg1, %c0_i32_10 : i32
    %11 = arith.extui %10 : i1 to i32
    %c0_i32_11 = arith.constant 0 : i32
    %12 = arith.cmpi ne, %11, %c0_i32_11 : i32
    scf.if %12 {
      %c0_12 = arith.constant 0 : index
      %c0_13 = arith.constant 0 : index
      %13 = vector.load %arg5[%c0_12, %c0_13] : memref<8x128xf32, #tpu.memory_space<vmem>>, vector<8x128xf32>
      %cst_14 = arith.constant 1.250000e-01 : f32
      %14 = vector.broadcast %cst_14 : f32 to vector<8x128xf32>
      %15 = arith.mulf %13, %14 : vector<8x128xf32>
      %c0_15 = arith.constant 0 : index
      %c0_16 = arith.constant 0 : index
      %16 = vector.load %arg4[%c0_15, %c0_16] : memref<1x128xf32, #tpu.memory_space<vmem>>, vector<1x128xf32>
      %17 = vector.broadcast %16 : vector<1x128xf32> to vector<8x128xf32>
      %18 = arith.addf %15, %17 : vector<8x128xf32>
      %19 = arith.mulf %18, %18 : vector<8x128xf32>
      %cst_17 = arith.constant dense<0.000000e+00> : vector<8xf32>
      %20 = vector.multi_reduction <add>, %19, %cst_17 [1] : vector<8x128xf32> to vector<8xf32>
      %21 = vector.shape_cast %20 : vector<8xf32> to vector<8x1xf32>
      %22 = math.sqrt %21 : vector<8x1xf32>
      %cst_18 = arith.constant 9.99999993E-9 : f32
      %23 = vector.broadcast %cst_18 : f32 to vector<8x1xf32>
      %24 = arith.addf %22, %23 : vector<8x1xf32>
      %25 = tpu.reciprocal %24 {approx = true} : vector<8x1xf32> -> vector<8x1xf32>
      %26 = arith.mulf %24, %25 : vector<8x1xf32>
      %cst_19 = arith.constant 2.000000e+00 : f32
      %27 = vector.broadcast %cst_19 : f32 to vector<8x1xf32>
      %28 = arith.subf %27, %26 : vector<8x1xf32>
      %29 = arith.mulf %25, %28 : vector<8x1xf32>
      %30 = vector.broadcast %29 : vector<8x1xf32> to vector<8x128xf32>
      %31 = arith.mulf %18, %30 : vector<8x128xf32>
      %c0_20 = arith.constant 0 : index
      %c0_21 = arith.constant 0 : index
      %32 = vector.load %arg5[%c0_20, %c0_21] : memref<8x128xf32, #tpu.memory_space<vmem>>, vector<8x128xf32>
      tpu.vector_store %arg5[%c0_20, %c0_21], %31 {strides = array<i32>} : memref<8x128xf32, #tpu.memory_space<vmem>>, vector<8x128xf32>,
    } else {
    }
    return
  }
  func.func @transform_0(%arg0: i32, %arg1: i32) -> (i32, i32, i32) {
    %c0_i32 = arith.constant 0 : i32
    %c0_i32_0 = arith.constant 0 : i32
    return %arg0, %arg1, %c0_i32 : i32, i32, i32
  }
  func.func @transform_1(%arg0: i32, %arg1: i32) -> (i32, i32) {
    %c0_i32 = arith.constant 0 : i32
    %c0_i32_0 = arith.constant 0 : i32
    %c0_i32_1 = arith.constant 0 : i32
    return %c0_i32, %c0_i32_0 : i32, i32
  }
  func.func @transform_2(%arg0: i32, %arg1: i32) -> (i32, i32) {
    %c0_i32 = arith.constant 0 : i32
    %c0_i32_0 = arith.constant 0 : i32
    %c0_i32_1 = arith.constant 0 : i32
    return %c0_i32, %c0_i32_0 : i32, i32
  }
  func.func @transform_3(%arg0: i32, %arg1: i32) -> (i32, i32) {
    %c0_i32 = arith.constant 0 : i32
    %c0_i32_0 = arith.constant 0 : i32
    return %arg0, %c0_i32 : i32, i32
  }
}

</mosaic_0001>

<bundles_post_ra>
// kernel: tpu_custom_call.1
= control target key start
LH: loop header
LB: loop body
LE: loop exit
PB: predicated region body
PF: predicated region fallthrough
CT: control target
= control target key end

     0   :  { %8 = vsyncpa [#allocation3], 0  ;;  %s358_s0 = inlined_call_operand.hbm [shape: f32[8,8,32], index: 0, kind: input, shape index: {}]   ;;  %s359_s1 = inlined_call_operand.hbm [shape: f32[32,128], index: 1, kind: input, shape index: {}]   ;;  %s360_s2 = inlined_call_operand.vmem [shape: f32[1,128], index: 2, kind: input, shape index: {}]   ;;  %s361_s3 = inlined_call_operand.hbm [shape: f32[8,128], index: 3, kind: output, shape index: {}]  }
   0x1   :  { %9 = vsyncpa [#allocation6], 0 }
   0x2   :  { %10 = vsyncpa [#allocation4], 0  ;;  %s15_s14 = sshll.u32 %s358_s0, 4  ;;  %s308_s15 = smov [#allocation2]   ;;  %s16_s14 = int_to_ptr.hbm [resolvable:$true] %s15_s14 }
   0x3   :  { %s17_s16 = sshll.u32 %s308_s15, 4  ;;  %s28_s19 = sshll.u32 %s359_s1, 4  ;;  %s18_s16 = int_to_ptr.vmem [resolvable:$true] %s17_s16  ;;  %s29_s19 = int_to_ptr.hbm [resolvable:$true] %s28_s19 }
   0x4   :  { %s309_s20 = smov 128   ;;  %s310_s21 = smov 8  }
   0x5   :  { %23 = dma.hbm_to_vmem [thread:$0]  %s16_s14, 1024, %s18_s16, [#allocation3], %s309_s20, %s309_s20, %s310_s21  }
   0x6   :  { %s311_s22 = smov [#allocation5]  }
   0x7   :  { %s30_s23 = sshll.u32 %s311_s22, 4  ;;  %s31_s23 = int_to_ptr.vmem [resolvable:$true] %s30_s23 }
   0x8   :  { %36 = dma.hbm_to_vmem [thread:$0]  %s29_s19, 512, %s31_s23, [#allocation6], %s309_s20, %s309_s20, %s310_s21  }
   0x9   :  { %302 = dma.done.wait [#allocation3], 1024  }
   0xa   :  { %303 = vsyncadd [#allocation3], 4294966272 }
   0xb   :  { %304 = dma.done.wait [#allocation6], 512  }
   0xc   :  { %305 = vsyncadd [#allocation6], 4294966784  ;;  %vm60_vm0 = vcmask 261120   ;;  %v121_v0 = vld [vmem:[#allocation5 + $0x18] sm:$0xff]  ;;  %v120_v1 = vld [vmem:[#allocation5 + $0x10] sm:$0xff]  ;;  %vm130_vm1 = vcmask 1041409  }
   0xd   :  { %158 = vmatpush.msra.mxu0 %v121_v0  ;;  %v119_v2 = vld [vmem:[#allocation5 + $0x8] sm:$0xff]  ;;  %v52_v3 = vld [vmem:[#allocation2] sm:$0xff]  ;;  %v54_v6 = vld [vmem:[#allocation2 + $0x10] sm:$0xff]  ;;  %vm132_vm2 = vcmask 1042434   ;;  %vm134_vm3 = vcmask 1043459   ;;  %vm136_vm4 = vcmask 1044484  }
   0xe   :  { %v53_v4 = vld [vmem:[#allocation2 + $0x8] sm:$0xff]  ;;  %v118_v5 = vld [vmem:[#allocation5] sm:$0xff]  ;;  %v55_v7 = vld [vmem:[#allocation2 + $0x18] sm:$0xff]  ;;  %v61_v9 = vsel %vm60_vm0, %v52_v3, 0.0  ;;  %v75_v16 = vsel %vm60_vm0, %v54_v6, 0.0  ;;  %vm138_vm5 = vcmask 1045509  }
   0xf   :  { %v56_v8 = vld [vmem:[#allocation2 + $0x20] sm:$0xff]  ;;  %v68_v10 = vsel %vm60_vm0, %v53_v4, 0.0  ;;  %159 = vmatpush.msra.mxu0 %v120_v1  ;;  %v57_v11 = vld [vmem:[#allocation2 + $0x28] sm:$0xff]  ;;  %v58_v12 = vld [vmem:[#allocation2 + $0x30] sm:$0xff]  ;;  %v62_v14 = vrot.slane %v61_v9, 4  ;;  %v76_v17 = vrot.slane %v75_v16, 4 }
  0x10   :  { %v59_v13 = vld [vmem:[#allocation2 + $0x38] sm:$0xff]  ;;  %v69_v15 = vrot.slane %v68_v10, 4  ;;  %v82_v18 = vsel %vm60_vm0, %v55_v7, 0.0  ;;  %v89_v19 = vsel %vm60_vm0, %v56_v8, 0.0  ;;  %v96_v20 = vsel %vm60_vm0, %v57_v11, 0.0  ;;  %s207_s27 = sshll.u32 %s361_s3, 4  ;;  %s208_s27 = int_to_ptr.hbm [resolvable:$true] %s207_s27 }
  0x11   :  { %160 = vmatpush.msra.mxu0 %v119_v2  ;;  %v63_v21 = vadd.f32 %v62_v14, %v61_v9  ;;  %v83_v23 = vrot.slane %v82_v18, 4  ;;  %v90_v24 = vrot.slane %v89_v19, 4  ;;  %v77_v25 = vadd.f32 %v76_v17, %v75_v16 }
  0x12   :  { %v70_v22 = vadd.f32 %v69_v15, %v68_v10  ;;  %v97_v26 = vrot.slane %v96_v20, 4  ;;  %v103_v27 = vsel %vm60_vm0, %v58_v12, 0.0  ;;  %v110_v28 = vsel %vm60_vm0, %v59_v13, 0.0  ;;  %v225_v12 = vld [vmem:[%s360_s2] ss:$0 sm:$0xff]  ;;  %s312_s2 = smov [#allocation7]  }
  0x13   :  { %161 = vmatpush.msra.mxu0 %v118_v5  ;;  %v64_v29 = vrot.slane %v63_v21, 2  ;;  %v84_v31 = vadd.f32 %v83_v23, %v82_v18  ;;  %v91_v32 = vadd.f32 %v90_v24, %v89_v19  ;;  %v78_v33 = vrot.slane %v77_v25, 2  ;;  %s205_s24 = sshll.u32 %s312_s2, 4  ;;  %s206_s24 = int_to_ptr.vmem [resolvable:$true] %s205_s24 }
  0x14   :  { %v71_v30 = vrot.slane %v70_v22, 2  ;;  %v98_v34 = vadd.f32 %v97_v26, %v96_v20  ;;  %v104_v35 = vrot.slane %v103_v27, 4  ;;  %v111_v36 = vrot.slane %v110_v28, 4 }
  0x15   :  { %v65_v37 = vadd.f32 %v64_v29, %v63_v21  ;;  %v85_v39 = vrot.slane %v84_v31, 2  ;;  %v92_v40 = vrot.slane %v91_v32, 2  ;;  %v79_v41 = vadd.f32 %v78_v33, %v77_v25 }
  0x16   :  { %v72_v38 = vadd.f32 %v71_v30, %v70_v22  ;;  %v99_v42 = vrot.slane %v98_v34, 2  ;;  %v105_v43 = vadd.f32 %v104_v35, %v103_v27  ;;  %v112_v44 = vadd.f32 %v111_v36, %v110_v28 }
  0x17   :  { %v66_v45 = vrot.slane %v65_v37, 1  ;;  %v86_v47 = vadd.f32 %v85_v39, %v84_v31  ;;  %v93_v48 = vadd.f32 %v92_v40, %v91_v32  ;;  %v80_v49 = vrot.slane %v79_v41, 1 }
  0x18   :  { %v73_v46 = vrot.slane %v72_v38, 1  ;;  %v100_v50 = vadd.f32 %v99_v42, %v98_v34  ;;  %v106_v51 = vrot.slane %v105_v43, 2  ;;  %v113_v52 = vrot.slane %v112_v44, 2 }
  0x19   :  { %v67_v53 = vadd.f32 %v66_v45, %v65_v37  ;;  %v87_v55 = vrot.slane %v86_v47, 1  ;;  %v94_v56 = vrot.slane %v93_v48, 1  ;;  %v81_v57 = vadd.f32 %v80_v49, %v79_v41 }
  0x1a   :  { %v74_v54 = vadd.f32 %v73_v46, %v72_v38  ;;  %v101_v58 = vrot.slane %v100_v50, 1  ;;  %v107_v59 = vadd.f32 %v106_v51, %v105_v43  ;;  %v114_v60 = vadd.f32 %v113_v52, %v112_v44 }
  0x1b   :  { %v88_v61 = vadd.f32 %v87_v55, %v86_v47  ;;  %v95_v62 = vadd.f32 %v94_v56, %v93_v48  ;;  %vm140_vm6 = vcmask 1046534   ;;  %vm142_vm7 = vcmask 1047559  }
  0x1c   :  { %v131_v63 = vsel %vm130_vm1, %v74_v54, %v67_v53  ;;  %v102_v0 = vadd.f32 %v101_v58, %v100_v50  ;;  %v108_v1 = vrot.slane %v107_v59, 1  ;;  %v115_v2 = vrot.slane %v114_v60, 1 }
  0x1d   :  { %v133_v3 = vsel %vm132_vm2, %v81_v57, %v131_v63 }
  0x1e   :  { %v135_v4 = vsel %vm134_vm3, %v88_v61, %v133_v3  ;;  %v109_v5 = vadd.f32 %v108_v1, %v107_v59  ;;  %v116_v6 = vadd.f32 %v115_v2, %v114_v60 }
  0x1f   :  { %v137_v7 = vsel %vm136_vm4, %v95_v62, %v135_v4 }
  0x20   :  { %v139_v8 = vsel %vm138_vm5, %v102_v0, %v137_v7 }
  0x21   :  { %v141_v9 = vsel %vm140_vm6, %v109_v5, %v139_v8 }
  0x22   :  { %v143_v10 = vsel %vm142_vm7, %v116_v6, %v141_v9 }
  0x23   :  { %218 = vmatmul.msk.f32.vlgmr.msra.gmra.mxu0 %vm60_vm0, %v143_v10 }
  0xa0   :  { %v163_v11 = vpop.f32.mrf.mxu0 }
  0xa1   :  { %v172_v13 = vmul.f32 0.125, %v163_v11 }
  0xa3   :  { %v177_v14 = vadd.f32 %v225_v12, %v172_v13 }
  0xa5   :  { %v178_v15 = vmul.f32 %v177_v14, %v177_v14 }
  0xa7   :  { %179 = vadd.xlane.f32.xlu0 %v178_v15 }
 0x11a   :  { %v180_v16 = vpop.xlane.xlu0 %179 }
 0x11b   :  { %226 = vrsqrt.f32 %v180_v16  ;;  %vm188_vm8 = vcmp.eq.f32.partialorder %v180_v16, inf  ;;  %v191_v24 = vand.u32 2147483648, %v180_v16  ;;  %vm190_vm9 = vcmp.eq.f32.partialorder %v180_v16, 0.0 }
 0x121   :  { %v227_v17 = vpop.eup %226 }
 0x122   :  { %v182_v18 = vmul.f32 %v227_v17, %v180_v16 }
 0x124   :  { %v183_v19 = vmul.f32 %v227_v17, %v182_v18 }
 0x126   :  { %v184_v20 = vmul.f32 0.5, %v183_v19 }
 0x128   :  { %v185_v21 = vsub.f32 1.5, %v184_v20 }
 0x12a   :  { %v186_v22 = vmul.f32 %v227_v17, %v185_v21 }
 0x12c   :  { %v187_v23 = vmul.f32 %v186_v22, %v180_v16 }
 0x12e   :  { %v189_v25 = vsel %vm188_vm8, %v180_v16, %v187_v23 }
 0x12f   :  { %v192_v26 = vsel %vm190_vm9, %v191_v24, %v189_v25 }
 0x130   :  { %v193_v27 = vadd.f32 1e-08, %v192_v26 }
 0x132   :  { %228 = vrcp.f32 %v193_v27 }
 0x138   :  { %v229_v28 = vpop.eup %228 }
 0x139   :  { %v195_v29 = vmul.f32 %v229_v28, %v193_v27 }
 0x13b   :  { %v196_v30 = vsub.f32 2.0, %v195_v29 }
 0x13d   :  { %v197_v31 = vmul.f32 %v229_v28, %v196_v30 }
 0x13f   :  { %v198_v32 = vmul.f32 %v197_v31, %v177_v14 }
 0x141   :  { %199 = vst [vmem:[#allocation7] sm:$0xff] %v198_v32 }
 0x142   :  { %210 = dma.vmem_to_hbm [thread:$0]  %s206_s24, 128, %s208_s27, [#allocation4]  }
 0x143   :  { %306 = dma.done.wait [#allocation4], 128  }
 0x144   :  { %307 = vsyncadd [#allocation4], 4294967168 }
 0x145   :  { %215 = vsyncpa [#allocation3], 1 }
 0x146   :  { %216 = vsyncpa [#allocation6], 1 }
 0x147   :  { %217 = vsyncpa [#allocation4], 1 }

// kernel: tpu_custom_call.1
= control target key start
LH: loop header
LB: loop body
LE: loop exit
PB: predicated region body
PF: predicated region fallthrough
CT: control target
= control target key end

     0   :  { %8 = vsyncpa [#allocation3], 0  ;;  %s358_s0 = inlined_call_operand.hbm [shape: f32[8,8,32], index: 0, kind: input, shape index: {}]   ;;  %s359_s1 = inlined_call_operand.hbm [shape: f32[32,128], index: 1, kind: input, shape index: {}]   ;;  %s360_s2 = inlined_call_operand.vmem [shape: f32[1,128], index: 2, kind: input, shape index: {}]   ;;  %s361_s3 = inlined_call_operand.hbm [shape: f32[8,128], index: 3, kind: output, shape index: {}]  }
   0x1   :  { %9 = vsyncpa [#allocation6], 0 }
   0x2   :  { %10 = vsyncpa [#allocation4], 0  ;;  %s15_s14 = sshll.u32 %s358_s0, 4  ;;  %s308_s15 = smov [#allocation2]   ;;  %s16_s14 = int_to_ptr.hbm [resolvable:$true] %s15_s14 }
   0x3   :  { %s17_s16 = sshll.u32 %s308_s15, 4  ;;  %s28_s19 = sshll.u32 %s359_s1, 4  ;;  %s18_s16 = int_to_ptr.vmem [resolvable:$true] %s17_s16  ;;  %s29_s19 = int_to_ptr.hbm [resolvable:$true] %s28_s19 }
   0x4   :  { %s309_s20 = smov 128   ;;  %s310_s21 = smov 8  }
   0x5   :  { %23 = dma.hbm_to_vmem [thread:$0]  %s16_s14, 1024, %s18_s16, [#allocation3], %s309_s20, %s309_s20, %s310_s21  }
   0x6   :  { %s311_s22 = smov [#allocation5]  }
   0x7   :  { %s30_s23 = sshll.u32 %s311_s22, 4  ;;  %s31_s23 = int_to_ptr.vmem [resolvable:$true] %s30_s23 }
   0x8   :  { %36 = dma.hbm_to_vmem [thread:$0]  %s29_s19, 512, %s31_s23, [#allocation6], %s309_s20, %s309_s20, %s310_s21  }
   0x9   :  { %302 = dma.done.wait [#allocation3], 1024  }
   0xa   :  { %303 = vsyncadd [#allocation3], 4294966272 }
   0xb   :  { %304 = dma.done.wait [#allocation6], 512  }
   0xc   :  { %305 = vsyncadd [#allocation6], 4294966784  ;;  %vm60_vm0 = vcmask 261120   ;;  %v121_v0 = vld [vmem:[#allocation5 + $0x18] sm:$0xff]  ;;  %v120_v1 = vld [vmem:[#allocation5 + $0x10] sm:$0xff]  ;;  %vm130_vm1 = vcmask 1041409  }
   0xd   :  { %158 = vmatpush.msra.mxu0 %v121_v0  ;;  %v119_v2 = vld [vmem:[#allocation5 + $0x8] sm:$0xff]  ;;  %v52_v3 = vld [vmem:[#allocation2] sm:$0xff]  ;;  %v54_v6 = vld [vmem:[#allocation2 + $0x10] sm:$0xff]  ;;  %vm132_vm2 = vcmask 1042434   ;;  %vm134_vm3 = vcmask 1043459   ;;  %vm136_vm4 = vcmask 1044484  }
   0xe   :  { %v53_v4 = vld [vmem:[#allocation2 + $0x8] sm:$0xff]  ;;  %v118_v5 = vld [vmem:[#allocation5] sm:$0xff]  ;;  %v55_v7 = vld [vmem:[#allocation2 + $0x18] sm:$0xff]  ;;  %v61_v9 = vsel %vm60_vm0, %v52_v3, 0.0  ;;  %v75_v16 = vsel %vm60_vm0, %v54_v6, 0.0  ;;  %vm138_vm5 = vcmask 1045509  }
   0xf   :  { %v56_v8 = vld [vmem:[#allocation2 + $0x20] sm:$0xff]  ;;  %v68_v10 = vsel %vm60_vm0, %v53_v4, 0.0  ;;  %159 = vmatpush.msra.mxu0 %v120_v1  ;;  %v57_v11 = vld [vmem:[#allocation2 + $0x28] sm:$0xff]  ;;  %v58_v12 = vld [vmem:[#allocation2 + $0x30] sm:$0xff]  ;;  %v62_v14 = vrot.slane %v61_v9, 4  ;;  %v76_v17 = vrot.slane %v75_v16, 4 }
  0x10   :  { %v59_v13 = vld [vmem:[#allocation2 + $0x38] sm:$0xff]  ;;  %v69_v15 = vrot.slane %v68_v10, 4  ;;  %v82_v18 = vsel %vm60_vm0, %v55_v7, 0.0  ;;  %v89_v19 = vsel %vm60_vm0, %v56_v8, 0.0  ;;  %v96_v20 = vsel %vm60_vm0, %v57_v11, 0.0  ;;  %s207_s27 = sshll.u32 %s361_s3, 4  ;;  %s208_s27 = int_to_ptr.hbm [resolvable:$true] %s207_s27 }
  0x11   :  { %160 = vmatpush.msra.mxu0 %v119_v2  ;;  %v63_v21 = vadd.f32 %v62_v14, %v61_v9  ;;  %v83_v23 = vrot.slane %v82_v18, 4  ;;  %v90_v24 = vrot.slane %v89_v19, 4  ;;  %v77_v25 = vadd.f32 %v76_v17, %v75_v16 }
  0x12   :  { %v70_v22 = vadd.f32 %v69_v15, %v68_v10  ;;  %v97_v26 = vrot.slane %v96_v20, 4  ;;  %v103_v27 = vsel %vm60_vm0, %v58_v12, 0.0  ;;  %v110_v28 = vsel %vm60_vm0, %v59_v13, 0.0  ;;  %v225_v12 = vld [vmem:[%s360_s2] ss:$0 sm:$0xff]  ;;  %s312_s2 = smov [#allocation7]  }
  0x13   :  { %161 = vmatpush.msra.mxu0 %v118_v5  ;;  %v64_v29 = vrot.slane %v63_v21, 2  ;;  %v84_v31 = vadd.f32 %v83_v23, %v82_v18  ;;  %v91_v32 = vadd.f32 %v90_v24, %v89_v19  ;;  %v78_v33 = vrot.slane %v77_v25, 2  ;;  %s205_s24 = sshll.u32 %s312_s2, 4  ;;  %s206_s24 = int_to_ptr.vmem [resolvable:$true] %s205_s24 }
  0x14   :  { %v71_v30 = vrot.slane %v70_v22, 2  ;;  %v98_v34 = vadd.f32 %v97_v26, %v96_v20  ;;  %v104_v35 = vrot.slane %v103_v27, 4  ;;  %v111_v36 = vrot.slane %v110_v28, 4 }
  0x15   :  { %v65_v37 = vadd.f32 %v64_v29, %v63_v21  ;;  %v85_v39 = vrot.slane %v84_v31, 2  ;;  %v92_v40 = vrot.slane %v91_v32, 2  ;;  %v79_v41 = vadd.f32 %v78_v33, %v77_v25 }
  0x16   :  { %v72_v38 = vadd.f32 %v71_v30, %v70_v22  ;;  %v99_v42 = vrot.slane %v98_v34, 2  ;;  %v105_v43 = vadd.f32 %v104_v35, %v103_v27  ;;  %v112_v44 = vadd.f32 %v111_v36, %v110_v28 }
  0x17   :  { %v66_v45 = vrot.slane %v65_v37, 1  ;;  %v86_v47 = vadd.f32 %v85_v39, %v84_v31  ;;  %v93_v48 = vadd.f32 %v92_v40, %v91_v32  ;;  %v80_v49 = vrot.slane %v79_v41, 1 }
  0x18   :  { %v73_v46 = vrot.slane %v72_v38, 1  ;;  %v100_v50 = vadd.f32 %v99_v42, %v98_v34  ;;  %v106_v51 = vrot.slane %v105_v43, 2  ;;  %v113_v52 = vrot.slane %v112_v44, 2 }
  0x19   :  { %v67_v53 = vadd.f32 %v66_v45, %v65_v37  ;;  %v87_v55 = vrot.slane %v86_v47, 1  ;;  %v94_v56 = vrot.slane %v93_v48, 1  ;;  %v81_v57 = vadd.f32 %v80_v49, %v79_v41 }
  0x1a   :  { %v74_v54 = vadd.f32 %v73_v46, %v72_v38  ;;  %v101_v58 = vrot.slane %v100_v50, 1  ;;  %v107_v59 = vadd.f32 %v106_v51, %v105_v43  ;;  %v114_v60 = vadd.f32 %v113_v52, %v112_v44 }
  0x1b   :  { %v88_v61 = vadd.f32 %v87_v55, %v86_v47  ;;  %v95_v62 = vadd.f32 %v94_v56, %v93_v48  ;;  %vm140_vm6 = vcmask 1046534   ;;  %vm142_vm7 = vcmask 1047559  }
  0x1c   :  { %v131_v63 = vsel %vm130_vm1, %v74_v54, %v67_v53  ;;  %v102_v0 = vadd.f32 %v101_v58, %v100_v50  ;;  %v108_v1 = vrot.slane %v107_v59, 1  ;;  %v115_v2 = vrot.slane %v114_v60, 1 }
  0x1d   :  { %v133_v3 = vsel %vm132_vm2, %v81_v57, %v131_v63 }
  0x1e   :  { %v135_v4 = vsel %vm134_vm3, %v88_v61, %v133_v3  ;;  %v109_v5 = vadd.f32 %v108_v1, %v107_v59  ;;  %v116_v6 = vadd.f32 %v115_v2, %v114_v60 }
  0x1f   :  { %v137_v7 = vsel %vm136_vm4, %v95_v62, %v135_v4 }
  0x20   :  { %v139_v8 = vsel %vm138_vm5, %v102_v0, %v137_v7 }
  0x21   :  { %v141_v9 = vsel %vm140_vm6, %v109_v5, %v139_v8 }
  0x22   :  { %v143_v10 = vsel %vm142_vm7, %v116_v6, %v141_v9 }
  0x23   :  { %218 = vmatmul.msk.f32.vlgmr.msra.gmra.mxu0 %vm60_vm0, %v143_v10 }
  0xa0   :  { %v163_v11 = vpop.f32.mrf.mxu0 }
  0xa1   :  { %v172_v13 = vmul.f32 0.125, %v163_v11 }
  0xa3   :  { %v177_v14 = vadd.f32 %v225_v12, %v172_v13 }
  0xa5   :  { %v178_v15 = vmul.f32 %v177_v14, %v177_v14 }
  0xa7   :  { %179 = vadd.xlane.f32.xlu0 %v178_v15 }
 0x11a   :  { %v180_v16 = vpop.xlane.xlu0 %179 }
 0x11b   :  { %226 = vrsqrt.f32 %v180_v16  ;;  %vm188_vm8 = vcmp.eq.f32.partialorder %v180_v16, inf  ;;  %v191_v24 = vand.u32 2147483648, %v180_v16  ;;  %vm190_vm9 = vcmp.eq.f32.partialorder %v180_v16, 0.0 }
 0x121   :  { %v227_v17 = vpop.eup %226 }
 0x122   :  { %v182_v18 = vmul.f32 %v227_v17, %v180_v16 }
 0x124   :  { %v183_v19 = vmul.f32 %v227_v17, %v182_v18 }
 0x126   :  { %v184_v20 = vmul.f32 0.5, %v183_v19 }
 0x128   :  { %v185_v21 = vsub.f32 1.5, %v184_v20 }
 0x12a   :  { %v186_v22 = vmul.f32 %v227_v17, %v185_v21 }
 0x12c   :  { %v187_v23 = vmul.f32 %v186_v22, %v180_v16 }
 0x12e   :  { %v189_v25 = vsel %vm188_vm8, %v180_v16, %v187_v23 }
 0x12f   :  { %v192_v26 = vsel %vm190_vm9, %v191_v24, %v189_v25 }
 0x130   :  { %v193_v27 = vadd.f32 1e-08, %v192_v26 }
 0x132   :  { %228 = vrcp.f32 %v193_v27 }
 0x138   :  { %v229_v28 = vpop.eup %228 }
 0x139   :  { %v195_v29 = vmul.f32 %v229_v28, %v193_v27 }
 0x13b   :  { %v196_v30 = vsub.f32 2.0, %v195_v29 }
 0x13d   :  { %v197_v31 = vmul.f32 %v229_v28, %v196_v30 }
 0x13f   :  { %v198_v32 = vmul.f32 %v197_v31, %v177_v14 }
 0x141   :  { %199 = vst [vmem:[#allocation7] sm:$0xff] %v198_v32 }
 0x142   :  { %210 = dma.vmem_to_hbm [thread:$0]  %s206_s24, 128, %s208_s27, [#allocation4]  }
 0x143   :  { %306 = dma.done.wait [#allocation4], 128  }
 0x144   :  { %307 = vsyncadd [#allocation4], 4294967168 }
 0x145   :  { %215 = vsyncpa [#allocation3], 1 }
 0x146   :  { %216 = vsyncpa [#allocation6], 1 }
 0x147   :  { %217 = vsyncpa [#allocation4], 1 }

</bundles_post_ra>
